<compile_context>
chip_gen: v7x
topology: tpu7x:2x2x1
jax: 0.10.0
libtpu: 0.0.40
codegen_flags: <defaults>
</compile_context>

<pallas_src>
import jax
import jax.numpy as jnp
from jax.experimental import pallas as pl
from jax.experimental.pallas import tpu as pltpu


def _silu(x):
    # silu(x) = x * sigmoid(x), with sigmoid(x) = 0.5*tanh(0.5*x) + 0.5
    # -> exactly one EUP transcendental per element.
    return 0.5 * x * (jnp.tanh(0.5 * x) + 1.0)


def mlp_kernel(xT_ref, w1t_ref, b1t_ref, w2t_ref, b2t_ref, w3t_ref, b3t_ref,
               oT_ref):
    # Transposed ("batch on the lane axis") layout:
    #   xT : (1, TB) f32     w1t: (H, 1) f32   b1t: (H, 1) f32
    #   w2t: (H, H)  mxu_dt  b2t: (H, 1) f32
    #   w3t: (K2, H) mxu_dt  b3t: (K2, 1) f32  oT: (K2, TB) f32
    xT = xT_ref[...]                                          # (1, TB)

    # Linear(1 -> H): contraction dim is 1 -> broadcast multiply on the VPU.
    h1 = _silu(w1t_ref[...] * xT + b1t_ref[...])              # (H, TB) f32

    # Linear(H -> H): MXU matmul (bf16 operands by default, f32 accumulate).
    h2 = jnp.dot(w2t_ref[...], h1.astype(w2t_ref.dtype),
                 preferred_element_type=jnp.float32) + b2t_ref[...]
    h2 = _silu(h2)                                            # (H, TB) f32

    # Linear(H -> k*k): MXU matmul.
    out = jnp.dot(w3t_ref[...], h2.astype(w3t_ref.dtype),
                  preferred_element_type=jnp.float32) + b3t_ref[...]
    oT_ref[...] = out.astype(oT_ref.dtype)                    # (K2, TB)


def _choose_tile(B, block_b):
    """Batch tile: lane-aligned, large (amortize per-step overhead), but
    capped near ceil(B/4) so v7x's two TensorCores both get grid steps."""
    b128 = pl.cdiv(B, 128) * 128
    tb = min(block_b, b128)
    tb = max(128, (tb // 128) * 128)
    if b128 >= 4 * 128:
        tb_cap = max(128, pl.cdiv(pl.cdiv(B, 4), 128) * 128)
        tb = min(tb, tb_cap)
    return tb


def simple_mlp_pallas(x, params, *, block_b=16384, mxu_dtype=jnp.bfloat16,
                      transpose_output=True):
    """x: (B, 1) float32.
    Returns (B, k*k) if transpose_output else the lane-dense (k*k, B) layout
    (same values, no extra HBM transpose pass)."""
    w1, b1, w2, b2, w3, b3 = params
    B = x.shape[0]
    H = w1.shape[1]
    K2 = w3.shape[1]

    tb = _choose_tile(B, block_b)
    B_pad = pl.cdiv(B, tb) * tb

    # Lane-dense, transposed operands (weights become (out, in)).
    xT = x.reshape(1, B)
    if B_pad != B:
        xT = jnp.pad(xT, ((0, 0), (0, B_pad - B)))
    w1t, b1t = w1.T, b1.reshape(H, 1)
    w2t, b2t = w2.T.astype(mxu_dtype), b2.reshape(H, 1)
    w3t, b3t = w3.T.astype(mxu_dtype), b3.reshape(K2, 1)

    grid = (B_pad // tb,)

    # Weights/biases: full-array block, constant index_map -> stay resident.
    const = lambda shape: pl.BlockSpec(shape, lambda i: (0, 0))

    cost = pl.CostEstimate(
        flops=2 * B_pad * H * (1 + H + K2),
        transcendentals=2 * B_pad * H,                   # one tanh per SiLU elem
        bytes_accessed=4 * B_pad * (1 + K2)              # x + out (f32)
        + 4 * H * 4                                      # w1t/b1t/b2t (+b3t) f32
        + jnp.dtype(mxu_dtype).itemsize * H * (H + K2),  # w2t/w3t
    )

    outT = pl.pallas_call(
        mlp_kernel,
        out_shape=jax.ShapeDtypeStruct((K2, B_pad), x.dtype),
        grid=grid,
        in_specs=[
            pl.BlockSpec((1, tb), lambda i: (0, i)),     # xT, tiled over batch
            const((H, 1)), const((H, 1)),                # w1t, b1t (resident)
            const((H, H)), const((H, 1)),                # w2t, b2t
            const((K2, H)), const((K2, 1)),              # w3t, b3t
        ],
        out_specs=pl.BlockSpec((K2, tb), lambda i: (0, i)),
        compiler_params=pltpu.CompilerParams(
            dimension_semantics=("parallel",)),          # dual-TC on v7x
        cost_estimate=cost,
    )(xT, w1t, b1t, w2t, b2t, w3t, b3t)

    outT = outT[:, :B]
    if transpose_output:
        # Torch-compatible (B, k*k).  NOTE: this is a separate XLA transpose
        # over HBM; pass transpose_output=False to consume (k*k, B) directly.
        return outT.T
    return outT


def init_params(key, kernel_size=3, hidden_dim=32, dtype=jnp.float32):
    """Deterministic init matching the shapes of SimpleMLP.__init__.
    Weights are stored as (in_features, out_features)."""
    out_size = kernel_size * kernel_size
    ks = jax.random.split(key, 6)

    def uni(k, shape, fan_in):
        bound = 1.0 / jnp.sqrt(fan_in)
        return jax.random.uniform(k, shape, dtype, -bound, bound)

    w1 = uni(ks[0], (1, hidden_dim), 1)
    b1 = uni(ks[1], (1, hidden_dim), 1)
    w2 = uni(ks[2], (hidden_dim, hidden_dim), hidden_dim)
    b2 = uni(ks[3], (1, hidden_dim), hidden_dim)
    w3 = uni(ks[4], (hidden_dim, out_size), hidden_dim)
    b3 = uni(ks[5], (1, out_size), hidden_dim)
    return (w1, b1, w2, b2, w3, b3)


def reference_mlp(x, params):
    """Pure-JAX reference (same math as the torch forward)."""
    w1, b1, w2, b2, w3, b3 = params

    def silu(v):
        return v * jax.nn.sigmoid(v)

    h = silu(x @ w1 + b1)
    h = silu(h @ w2 + b2)
    return h @ w3 + b3


if __name__ == "__main__":
    kernel_size = 3          # output_size = 9
    hidden_dim = 32
    batch = 640              # not a multiple of the tile -> exercises padding
                             # and a multi-step (pipelined) batch grid

    key = jax.random.PRNGKey(0)
    k_x, k_p = jax.random.split(key)
    x = jax.random.normal(k_x, (batch, 1), dtype=jnp.float32)
    params = init_params(k_p, kernel_size=kernel_size, hidden_dim=hidden_dim)

    ref = reference_mlp(x, params)

    # 1) f32-MXU validation path: tight tolerance against the f32 reference.
    out_f32 = simple_mlp_pallas(x, params, mxu_dtype=jnp.float32)
    out_f32 = jax.block_until_ready(out_f32)
    assert out_f32.shape == (batch, kernel_size * kernel_size)
    assert jnp.allclose(out_f32, ref, atol=1e-4, rtol=1e-4), \
        "f32 path mismatch vs reference"

    # 2) Default fast path: bf16 MXU operands, looser tolerance.
    out_bf = simple_mlp_pallas(x, params)
    out_bf = jax.block_until_ready(out_bf)
    assert out_bf.shape == (batch, kernel_size * kernel_size)
    assert jnp.allclose(out_bf, ref, atol=5e-2, rtol=5e-2), \
        "bf16-MXU path mismatch vs reference"

    # 3) Lane-dense output layout (no wrapper transpose), same values.
    out_kb = simple_mlp_pallas(x, params, transpose_output=False)
    out_kb = jax.block_until_ready(out_kb)
    assert out_kb.shape == (kernel_size * kernel_size, batch)
    assert jnp.allclose(out_kb.T, out_bf, atol=0, rtol=0), \
        "transposed-output path mismatch"

    print("KERNEL_OK")
</pallas_src>

<mosaic_0001>
module attributes {stable_mosaic.version = 11 : i64} {
  func.func @mlp_kernel(%arg0: i32, %arg1: memref<1x256xf32, #tpu.memory_space<vmem>>, %arg2: memref<32x1xf32, #tpu.memory_space<vmem>>, %arg3: memref<32x1xf32, #tpu.memory_space<vmem>>, %arg4: memref<32x32xf32, #tpu.memory_space<vmem>>, %arg5: memref<32x1xf32, #tpu.memory_space<vmem>>, %arg6: memref<9x32xf32, #tpu.memory_space<vmem>>, %arg7: memref<9x1xf32, #tpu.memory_space<vmem>>, %arg8: memref<9x256xf32, #tpu.memory_space<vmem>>) attributes {dimension_semantics = [#tpu.dimension_semantics<parallel>], iteration_bounds = array<i64: 3>, scalar_prefetch = 0 : i64, scratch_operands = 0 : i64, tpu.core_type = #tpu.core_type<tc>, window_params = [{transform_indices = @transform_0, window_bounds = array<i64: 1, 256>}, {pipeline_mode = #tpu.pipeline_mode<synchronous>, transform_indices = @transform_1, window_bounds = array<i64: 32, 1>}, {pipeline_mode = #tpu.pipeline_mode<synchronous>, transform_indices = @transform_2, window_bounds = array<i64: 32, 1>}, {pipeline_mode = #tpu.pipeline_mode<synchronous>, transform_indices = @transform_3, window_bounds = array<i64: 32, 32>}, {pipeline_mode = #tpu.pipeline_mode<synchronous>, transform_indices = @transform_4, window_bounds = array<i64: 32, 1>}, {pipeline_mode = #tpu.pipeline_mode<synchronous>, transform_indices = @transform_5, window_bounds = array<i64: 9, 32>}, {pipeline_mode = #tpu.pipeline_mode<synchronous>, transform_indices = @transform_6, window_bounds = array<i64: 9, 1>}, {transform_indices = @transform_7, window_bounds = array<i64: 9, 256>}]} {
    %c0 = arith.constant 0 : index
    %c0_0 = arith.constant 0 : index
    %0 = vector.load %arg1[%c0, %c0_0] : memref<1x256xf32, #tpu.memory_space<vmem>>, vector<1x256xf32>
    %c0_1 = arith.constant 0 : index
    %c0_2 = arith.constant 0 : index
    %1 = vector.load %arg2[%c0_1, %c0_2] : memref<32x1xf32, #tpu.memory_space<vmem>>, vector<32x1xf32>
    %2 = vector.broadcast %1 : vector<32x1xf32> to vector<32x256xf32>
    %3 = vector.broadcast %0 : vector<1x256xf32> to vector<32x256xf32>
    %4 = arith.mulf %2, %3 : vector<32x256xf32>
    %c0_3 = arith.constant 0 : index
    %c0_4 = arith.constant 0 : index
    %5 = vector.load %arg3[%c0_3, %c0_4] : memref<32x1xf32, #tpu.memory_space<vmem>>, vector<32x1xf32>
    %6 = vector.broadcast %5 : vector<32x1xf32> to vector<32x256xf32>
    %7 = arith.addf %4, %6 : vector<32x256xf32>
    %cst = arith.constant 5.000000e-01 : f32
    %8 = vector.broadcast %cst : f32 to vector<32x256xf32>
    %9 = arith.mulf %8, %7 : vector<32x256xf32>
    %cst_5 = arith.constant 5.000000e-01 : f32
    %10 = vector.broadcast %cst_5 : f32 to vector<32x256xf32>
    %11 = arith.mulf %10, %7 : vector<32x256xf32>
    %12 = math.tanh %11 : vector<32x256xf32>
    %cst_6 = arith.constant 1.000000e+00 : f32
    %13 = vector.broadcast %cst_6 : f32 to vector<32x256xf32>
    %14 = arith.addf %12, %13 : vector<32x256xf32>
    %15 = arith.mulf %9, %14 : vector<32x256xf32>
    %c0_7 = arith.constant 0 : index
    %c0_8 = arith.constant 0 : index
    %16 = vector.load %arg4[%c0_7, %c0_8] : memref<32x32xf32, #tpu.memory_space<vmem>>, vector<32x32xf32>
    %cst_9 = arith.constant dense<0.000000e+00> : vector<32x256xf32>
    %17 = tpu.matmul %16, %15, %cst_9 {dimension_numbers = #tpu.dot_dimension_numbers<[1], [0], [0], [1], [0, 0, 1, 1], [], []>} : vector<32x32xf32>, vector<32x256xf32>, vector<32x256xf32> -> vector<32x256xf32>
    %c0_10 = arith.constant 0 : index
    %c0_11 = arith.constant 0 : index
    %18 = vector.load %arg5[%c0_10, %c0_11] : memref<32x1xf32, #tpu.memory_space<vmem>>, vector<32x1xf32>
    %19 = vector.broadcast %18 : vector<32x1xf32> to vector<32x256xf32>
    %20 = arith.addf %17, %19 : vector<32x256xf32>
    %cst_12 = arith.constant 5.000000e-01 : f32
    %21 = vector.broadcast %cst_12 : f32 to vector<32x256xf32>
    %22 = arith.mulf %21, %20 : vector<32x256xf32>
    %cst_13 = arith.constant 5.000000e-01 : f32
    %23 = vector.broadcast %cst_13 : f32 to vector<32x256xf32>
    %24 = arith.mulf %23, %20 : vector<32x256xf32>
    %25 = math.tanh %24 : vector<32x256xf32>
    %cst_14 = arith.constant 1.000000e+00 : f32
    %26 = vector.broadcast %cst_14 : f32 to vector<32x256xf32>
    %27 = arith.addf %25, %26 : vector<32x256xf32>
    %28 = arith.mulf %22, %27 : vector<32x256xf32>
    %c0_15 = arith.constant 0 : index
    %c0_16 = arith.constant 0 : index
    %29 = vector.load %arg6[%c0_15, %c0_16] : memref<9x32xf32, #tpu.memory_space<vmem>>, vector<9x32xf32>
    %cst_17 = arith.constant dense<0.000000e+00> : vector<9x256xf32>
    %30 = tpu.matmul %29, %28, %cst_17 {dimension_numbers = #tpu.dot_dimension_numbers<[1], [0], [0], [1], [0, 0, 1, 1], [], []>} : vector<9x32xf32>, vector<32x256xf32>, vector<9x256xf32> -> vector<9x256xf32>
    %c0_18 = arith.constant 0 : index
    %c0_19 = arith.constant 0 : index
    %31 = vector.load %arg7[%c0_18, %c0_19] : memref<9x1xf32, #tpu.memory_space<vmem>>, vector<9x1xf32>
    %32 = vector.broadcast %31 : vector<9x1xf32> to vector<9x256xf32>
    %33 = arith.addf %30, %32 : vector<9x256xf32>
    %c0_20 = arith.constant 0 : index
    %c0_21 = arith.constant 0 : index
    %34 = vector.load %arg8[%c0_20, %c0_21] : memref<9x256xf32, #tpu.memory_space<vmem>>, vector<9x256xf32>
    tpu.vector_store %arg8[%c0_20, %c0_21], %33 {strides = array<i32>} : memref<9x256xf32, #tpu.memory_space<vmem>>, vector<9x256xf32>,
    return
  }
  func.func @transform_0(%arg0: i32) -> (i32, i32) {
    %c0_i32 = arith.constant 0 : i32
    %c0_i32_0 = arith.constant 0 : i32
    return %c0_i32, %arg0 : i32, i32
  }
  func.func @transform_1(%arg0: i32) -> (i32, i32) {
    %c0_i32 = arith.constant 0 : i32
    %c0_i32_0 = arith.constant 0 : i32
    %c0_i32_1 = arith.constant 0 : i32
    return %c0_i32, %c0_i32_0 : i32, i32
  }
  func.func @transform_2(%arg0: i32) -> (i32, i32) {
    %c0_i32 = arith.constant 0 : i32
    %c0_i32_0 = arith.constant 0 : i32
    %c0_i32_1 = arith.constant 0 : i32
    return %c0_i32, %c0_i32_0 : i32, i32
  }
  func.func @transform_3(%arg0: i32) -> (i32, i32) {
    %c0_i32 = arith.constant 0 : i32
    %c0_i32_0 = arith.constant 0 : i32
    %c0_i32_1 = arith.constant 0 : i32
    return %c0_i32, %c0_i32_0 : i32, i32
  }
  func.func @transform_4(%arg0: i32) -> (i32, i32) {
    %c0_i32 = arith.constant 0 : i32
    %c0_i32_0 = arith.constant 0 : i32
    %c0_i32_1 = arith.constant 0 : i32
    return %c0_i32, %c0_i32_0 : i32, i32
  }
  func.func @transform_5(%arg0: i32) -> (i32, i32) {
    %c0_i32 = arith.constant 0 : i32
    %c0_i32_0 = arith.constant 0 : i32
    %c0_i32_1 = arith.constant 0 : i32
    return %c0_i32, %c0_i32_0 : i32, i32
  }
  func.func @transform_6(%arg0: i32) -> (i32, i32) {
    %c0_i32 = arith.constant 0 : i32
    %c0_i32_0 = arith.constant 0 : i32
    %c0_i32_1 = arith.constant 0 : i32
    return %c0_i32, %c0_i32_0 : i32, i32
  }
  func.func @transform_7(%arg0: i32) -> (i32, i32) {
    %c0_i32 = arith.constant 0 : i32
    %c0_i32_0 = arith.constant 0 : i32
    return %c0_i32, %arg0 : i32, i32
  }
}

</mosaic_0001>

<bundles_post_ra>
// kernel: tpu_custom_call.1
= control target key start
LH: loop header
LB: loop body
LE: loop exit
PB: predicated region body
PF: predicated region fallthrough
CT: control target
= control target key end

     0   :  { %12 = vsyncpa [#allocation3], 0  ;;  %s1117_s0 = inlined_call_operand.vmem [shape: f32[1,768], index: 0, kind: input, shape index: {}]   ;;  %s1118_s1 = inlined_call_operand.vmem [shape: f32[32,1], index: 1, kind: input, shape index: {}]   ;;  %s1119_s2 = inlined_call_operand.vmem [shape: f32[32,1], index: 2, kind: input, shape index: {}]   ;;  %s1120_s3 = inlined_call_operand.vmem [shape: f32[32,32], index: 3, kind: input, shape index: {}]   ;;  %s1121_s4 = inlined_call_operand.vmem [shape: f32[32,1], index: 4, kind: input, shape index: {}]   ;;  %s1122_s5 = inlined_call_operand.vmem [shape: f32[9,32], index: 5, kind: input, shape index: {}]   ;;  %s1123_s6 = inlined_call_operand.vmem [shape: f32[9,1], index: 6, kind: input, shape index: {}]   ;;  %s1124_s7 = inlined_call_operand.hbm [shape: f32[9,768], index: 7, kind: output, shape index: {}]  }
   0x1   :  { %14 = vsyncpa [#allocation3 + $0x1], 0  ;;  %s943_s24 = smov 0   ;;  %s945_s25 = smov 0  }
   0x2   :  { %s947_s26 = smov 0   ;;  %s949_s27 = smov 0  }
   0x3 LB: > { %s964_s28 = sadd.s32 4294967295, %s895_s27   ;;  %s721_s29 = sadd.s32 4294967294, %s895_s27   ;;  %s895_s27 = sphi %s949_s27, %s1130_s27   ;;  %s891_s26 = sphi %s947_s26, %s1129_s26   ;;  %s887_s25 = sphi %s945_s25, %s1128_s25   ;;  %s883_s24 = sphi %s943_s24, %s1127_s24  }
   0x4   : > { %s968_s30 = sadd.s32 1, %s895_s27   ;;  %s179_s8 = sadd.s32 1, %s891_s26 }
   0x5   : > { %s176_s9 = ssub.s32 %s895_s27, %s968_s30  ;;  %p189_p0 = scmp.ne.s32.totalorder %s891_s26, %s887_s25 }
   0x6   : > { %p177_p1 = scmp.eq.s32.totalorder %s176_s9, 0  ;;  %p190_p2 = scmp.eq.s32.totalorder %s964_s28, 2 }
   0x7   : > { %p195_p3 = scmp.ne.s32.totalorder %s887_s25, %s883_s24  ;;  %p196_p4 = scmp.eq.s32.totalorder %s721_s29, 2 }
   0x8   : > { %s979_s10 = scalar_select %p177_p1, %s891_s26, %s179_s8  }
   0x9   : > { %p981_p5 = por %p190_p2, %p189_p0  ;;  %p985_p6 = por %p196_p4, %p195_p3 }
   0xa   : > { %p724_p7 = scmp.ge.s32.totalorder %s895_s27, 1  ;;  %p240_p8 = scmp.lt.s32.totalorder %s895_s27, 4 }
   0xc   : > { %p241_p9 = pnand %p724_p7, %p240_p8 }
   0xd   : > { %v321_v0 = vld [vmem:[%s1119_s2] sm:$0xff] (!%p241_p9)  ;;  %v897_v2 = vmov (!%p241_p9), 0   ;;  %v322_v3 = vld [vmem:[%s1119_s2 + $0x8] sm:$0xff] (!%p241_p9)  ;;  %v281_v5 = vld [vmem:[%s1118_s1 + $0x18] sm:$0xff] (!%p241_p9)  ;;  %v898_v15 = vmov (!%p241_p9), 0.0   ;;  %s726_s13 = sshll.u32 (!%p241_p9), %s964_s28, 1  ;;  %v303_v16 = vlaneseq (!%p241_p9) }
   0xe   : > { %244 = sbr.rel (%p241_p9) target bundleno = 668 (0x29c), region = 48  ;;  %v278_v1 = vld [vmem:[%s1118_s1] sm:$0xff] (!%p241_p9)  ;;  %800 = vset.pattern.permute.xlu1 (!%p241_p9), %v897_v2  ;;  %799 = vset.pattern.permute.xlu0 (!%p241_p9), %v897_v2  ;;  %v279_v4 = vld [vmem:[%s1118_s1 + $0x8] sm:$0xff] (!%p241_p9)  ;;  %v280_v6 = vld [vmem:[%s1118_s1 + $0x10] sm:$0xff] (!%p241_p9)  ;;  %p272_p10 = scmp.lt.s32.totalorder (!%p241_p9), %s726_s13, 5  ;;  %vm413_vm0 = vcmask (!%p241_p9), 261120  }
   0xf   : > { %327 = vperm.xlu1 (!%p241_p9), %800, %v321_v0   ;;  %284 = vperm.xlu0 (!%p241_p9), %799, %v278_v1   ;;  %v324_v7 = vld [vmem:[%s1119_s2 + $0x18] sm:$0xff] (!%p241_p9)  ;;  %v323_v8 = vld [vmem:[%s1119_s2 + $0x10] sm:$0xff] (!%p241_p9)  ;;  %v390_v9 = vld [vmem:[%s1121_s4 + $0x8] sm:$0xff] (!%p241_p9)  ;;  %v304_v17 = vshrl.u32 (!%p241_p9), %v303_v16, 7  ;;  %s268_s15 = sand.u32 (!%p241_p9), 1, %s887_s25   ;;  %s738_s19 = sshll.u32 (!%p241_p9), %s964_s28, 8 }
  0x10   : > { %v389_v10 = vld [vmem:[%s1121_s4] sm:$0xff] (!%p241_p9)  ;;  %v392_v11 = vld [vmem:[%s1121_s4 + $0x18] sm:$0xff] (!%p241_p9)  ;;  %v391_v12 = vld [vmem:[%s1121_s4 + $0x10] sm:$0xff] (!%p241_p9)  ;;  %490 = vmatprep.mubr.f32.mxu0 (!%p241_p9), %v898_v15  ;;  %631 = vmatprep.mubr.f32.mxu1 (!%p241_p9), %v898_v15  ;;  %s1074_s22 = scalar_lea.hbm (!%p241_p9), %s1124_s7, %s738_s19  ;;  %s1076_s28 = scalar_lea.sflag (!%p241_p9), [#allocation3], %s268_s15 }
  0x11   : > { %v550_v13 = vld [vmem:[%s1123_s6 + $0x8] sm:$0x1] (!%p241_p9)  ;;  %v549_v14 = vld [vmem:[%s1123_s6] sm:$0xff] (!%p241_p9)  ;;  %v305_v18 = vsub.s32 (!%p241_p9), 0, %v304_v17  ;;  %v309_v19 = vsub.s32 (!%p241_p9), 1, %v304_v17  ;;  %s899_s29 = smov (!%p241_p9), [#allocation2]  }
  0x12   : > { %s837_s8 = sshll.u32 (!%p241_p9), %s899_s29, 4  ;;  %s838_s8 = int_to_ptr.vmem [resolvable:$false] %s837_s8 }
  0x13   : > { %332 = vperm.xlu1 (!%p241_p9), %800, %v322_v3   ;;  %289 = vperm.xlu0 (!%p241_p9), %799, %v279_v4   ;;  %s839_s9 = scalar_lea.vmem (!%p241_p9), %s838_s8, 1024 }
  0x15   : > { %s1132_s13 = smov (!%p272_p10, %s726_s13), 5 }
  0x16   : > { %s274_s16 = scalar_lea.vmem %s1117_s0, %s1132_s13 }
  0x17   : > { %299 = vperm.xlu1 %800, %v281_v5   ;;  %294 = vperm.xlu0 %799, %v280_v6   ;;  %v277_v20 = vld [vmem:[%s274_s16] sm:$0x3]  ;;  %s725_s16 = sshll.u32 %s268_s15, 5 }
  0x18   : > { %v306_v21 = vrot.slane %v277_v20, %v305_v18  ;;  %v310_v22 = vrot.slane %v277_v20, %v309_v19  ;;  %v385_v20 = vld [vmem:[%s1120_s3] sm:$0xff]  ;;  %s270_s17 = scalar_lea.vmem [#allocation2], %s725_s16 }
  0x19   : > { %s662_s18 = sshll.u32 %s270_s17, 4  ;;  %s1069_s18 = int_to_ptr.vmem [resolvable:$true] %s662_s18 }
  0x1a   : > { %s833_s23 = scalar_lea.vmem %s1069_s18, 512  ;;  %p840_p0 = scmp.lt.s32.totalorder %s1069_s18, %s838_s8 }
  0x1b   : > { %342 = vperm.xlu1 %800, %v324_v7   ;;  %337 = vperm.xlu0 %799, %v323_v8   ;;  %p834_p11 = scmp.ne.s32.totalorder %s1069_s18, %s833_s23  ;;  %p841_p1 = scmp.lt.s32.totalorder %s839_s9, %s833_s23 }
  0x1d   : > { %p835_p12 = pnand %p834_p11, %p981_p5  ;;  %p842_p2 = por %p841_p1, %p840_p0 }
  0x1f   : > { %400 = vperm.xlu1 %800, %v390_v9   ;;  %395 = vperm.xlu0 %799, %v389_v10   ;;  %p836_p13 = pneg %p835_p12 }
  0x21   : > { %p843_p3 = pnand %p842_p2, %p836_p13 }
  0x23   : > { %410 = vperm.xlu1 %800, %v392_v11   ;;  %405 = vperm.xlu0 %799, %v391_v12  }
  0x27   : > { %558 = vperm.xlu1 %800, %v550_v13   ;;  %553 = vperm.xlu0 %799, %v549_v14  }
  0x8e   : > { %v328_v23 = vpop.permute.xlu1 %327  ;;  %v285_v24 = vpop.permute.xlu0 %284 }
  0x8f   : > { %v313_v25 = vmul.f32 %v306_v21, %v285_v24  ;;  %v314_v26 = vmul.f32 %v310_v22, %v285_v24 }
  0x91   : > { %v345_v27 = vadd.f32 %v328_v23, %v313_v25  ;;  %v346_v28 = vadd.f32 %v328_v23, %v314_v26  ;;  %v388_v23 = vld [vmem:[%s1120_s3 + $0x18] sm:$0xff] }
  0x92   : > { %v333_v29 = vpop.permute.xlu1 %332  ;;  %v290_v30 = vpop.permute.xlu0 %289 }
  0x93   : > { %v353_v31 = vmul.f32 0.5, %v345_v27  ;;  %v315_v32 = vmul.f32 %v306_v21, %v290_v30  ;;  %v316_v33 = vmul.f32 %v310_v22, %v290_v30  ;;  %v354_v34 = vmul.f32 0.5, %v346_v28 }
  0x95   : > { %801 = vtanh.f32 %v353_v31  ;;  %v347_v35 = vadd.f32 %v333_v29, %v315_v32  ;;  %v348_v36 = vadd.f32 %v333_v29, %v316_v33 }
  0x96   : > { %v300_v37 = vpop.permute.xlu1 %299  ;;  %v295_v38 = vpop.permute.xlu0 %294  ;;  %803 = vtanh.f32 %v354_v34 }
  0x97   : > { %v355_v39 = vmul.f32 0.5, %v347_v35  ;;  %v319_v40 = vmul.f32 %v306_v21, %v300_v37  ;;  %v356_v41 = vmul.f32 0.5, %v348_v36  ;;  %v320_v42 = vmul.f32 %v310_v22, %v300_v37 }
  0x98   : > { %v317_v43 = vmul.f32 %v306_v21, %v295_v38  ;;  %v318_v44 = vmul.f32 %v310_v22, %v295_v38  ;;  %v386_v21 = vld [vmem:[%s1120_s3 + $0x8] sm:$0xff]  ;;  %v387_v22 = vld [vmem:[%s1120_s3 + $0x10] sm:$0xff] }
  0x99   : > { %805 = vtanh.f32 %v355_v39 }
  0x9a   : > { %v343_v45 = vpop.permute.xlu1 %342  ;;  %v338_v46 = vpop.permute.xlu0 %337  ;;  %807 = vtanh.f32 %v356_v41 }
  0x9b   : > { %v351_v47 = vadd.f32 %v343_v45, %v319_v40  ;;  %v352_v48 = vadd.f32 %v343_v45, %v320_v42  ;;  %v349_v49 = vadd.f32 %v338_v46, %v317_v43  ;;  %v350_v50 = vadd.f32 %v338_v46, %v318_v44 }
  0x9d   : > { %v359_v51 = vmul.f32 0.5, %v351_v47  ;;  %v360_v52 = vmul.f32 0.5, %v352_v48  ;;  %v357_v53 = vmul.f32 0.5, %v349_v49  ;;  %v358_v54 = vmul.f32 0.5, %v350_v50 }
  0x9e   : > { %v396_v24 = vpop.permute.xlu0 %395  ;;  %v401_v30 = vpop.permute.xlu1 %400 }
  0x9f   : > { %v802_v55 = vpop.eup %801  ;;  %809 = vtanh.f32 %v359_v51 }
  0xa0   : > { %v804_v56 = vpop.eup %803  ;;  %811 = vtanh.f32 %v360_v52  ;;  %v369_v57 = vadd.f32 1.0, %v802_v55 }
  0xa1   : > { %813 = vtanh.f32 %v357_v53  ;;  %v370_v59 = vadd.f32 1.0, %v804_v56 }
  0xa2   : > { %815 = vtanh.f32 %v358_v54  ;;  %v377_v63 = vmul.f32 %v369_v57, %v353_v31  ;;  %v406_v37 = vpop.permute.xlu0 %405  ;;  %v411_v44 = vpop.permute.xlu1 %410 }
  0xa3   : > { %v806_v58 = vpop.eup %805  ;;  %v378_v1 = vmul.f32 %v370_v59, %v354_v34 }
  0xa4   : > { %v808_v60 = vpop.eup %807  ;;  %v371_v61 = vadd.f32 1.0, %v806_v58 }
  0xa5   : > { %v372_v62 = vadd.f32 1.0, %v808_v60 }
  0xa6   : > { %v379_v0 = vmul.f32 %v371_v61, %v355_v39 }
  0xa7   : > { %v380_v2 = vmul.f32 %v372_v62, %v356_v41 }
  0xa8   : > { %v741_v3 = vpack.c.bf16 %v379_v0, %v377_v63 }
  0xa9   : > { %v810_v4 = vpop.eup %809  ;;  %v739_v5 = vpack.c.bf16 %v380_v2, %v378_v1 }
  0xaa   : > { %v812_v6 = vpop.eup %811  ;;  %v375_v7 = vadd.f32 1.0, %v810_v4 }
  0xab   : > { %v814_v8 = vpop.eup %813  ;;  %v376_v9 = vadd.f32 1.0, %v812_v6  ;;  %740 = vmatprep.subr.bf16.mxu0 %v739_v5 }
  0xac   : > { %v816_v10 = vpop.eup %815  ;;  %v383_v11 = vmul.f32 %v375_v7, %v359_v51  ;;  %v373_v12 = vadd.f32 1.0, %v814_v8  ;;  %742 = vmatpush1.bf16.msra.mxu0 %v741_v3 }
  0xad   : > { %v384_v13 = vmul.f32 %v376_v9, %v360_v52  ;;  %v374_v14 = vadd.f32 1.0, %v816_v10 }
  0xae   : > { %v381_v16 = vmul.f32 %v373_v12, %v357_v53 }
  0xaf   : > { %v382_v17 = vmul.f32 %v374_v14, %v358_v54 }
  0xb0   : > { %v745_v18 = vpack.c.bf16 %v383_v11, %v381_v16 }
  0xb1   : > { %v743_v19 = vpack.c.bf16 %v384_v13, %v382_v17  ;;  %v547_v17 = vld [vmem:[%s1122_s5] sm:$0xff] }
  0xb3   : > { %744 = vmatprep.subr.bf16.mxu0 %v743_v19  ;;  %v554_v19 = vpop.permute.xlu0 %553 }
  0xb4   : > { %746 = vmatpush1.bf16.msra.mxu0 %v745_v18  ;;  %v548_v18 = vld [vmem:[%s1122_s5 + $0x8] sm:$0x1] }
  0xb7   : > { %727 = vmatmul.mubr.msk.f32.vlgmr.msra.gmra.mrb[0].mxu0 %vm413_vm0, %v385_v20 }
  0xb8   : > { %496 = vmatprep.mubr.f32.mxu0 %v898_v15 }
  0xbb   : > { %728 = vmatmul.mubr.msk.f32.gmra.mrb[2].mxu0 %vm413_vm0, %v386_v21 }
  0xbc   : > { %502 = vmatprep.mubr.f32.mxu0 %v898_v15 }
  0xbf   : > { %729 = vmatmul.mubr.msk.f32.gmra.mrb[4].mxu0 %vm413_vm0, %v387_v22 }
  0xc0   : > { %508 = vmatprep.mubr.f32.mxu0 %v898_v15 }
  0xc3   : > { %730 = vmatmul.mubr.msk.f32.gmra.mrb[6].mxu0 %vm413_vm0, %v388_v23 }
 0x18a   : > { %v492_v25 = vpop.f32.mrb[0].mxu0 }
 0x18b   : > { %v493_v26 = vadd.f32 %v492_v25, %v396_v24  ;;  %v494_v27 = vpop.f32.mrb[1].mxu0 }
 0x18c   : > { %v495_v28 = vadd.f32 %v494_v27, %v396_v24  ;;  %v559_v24 = vpop.permute.xlu1 %558 }
 0x18d   : > { %v515_v29 = vmul.f32 0.5, %v493_v26 }
 0x18e   : > { %v516_v31 = vmul.f32 0.5, %v495_v28  ;;  %v498_v32 = vpop.f32.mrb[2].mxu0 }
 0x18f   : > { %817 = vtanh.f32 %v515_v29  ;;  %v499_v33 = vadd.f32 %v498_v32, %v401_v30  ;;  %v500_v34 = vpop.f32.mrb[3].mxu0 }
 0x190   : > { %819 = vtanh.f32 %v516_v31  ;;  %v501_v35 = vadd.f32 %v500_v34, %v401_v30 }
 0x191   : > { %v517_v36 = vmul.f32 0.5, %v499_v33 }
 0x192   : > { %v518_v38 = vmul.f32 0.5, %v501_v35  ;;  %v504_v39 = vpop.f32.mrb[4].mxu0 }
 0x193   : > { %821 = vtanh.f32 %v517_v36  ;;  %v505_v40 = vadd.f32 %v504_v39, %v406_v37  ;;  %v506_v41 = vpop.f32.mrb[5].mxu0 }
 0x194   : > { %823 = vtanh.f32 %v518_v38  ;;  %v507_v42 = vadd.f32 %v506_v41, %v406_v37 }
 0x195   : > { %v519_v43 = vmul.f32 0.5, %v505_v40 }
 0x196   : > { %v520_v45 = vmul.f32 0.5, %v507_v42  ;;  %v510_v46 = vpop.f32.mrb[6].mxu0 }
 0x197   : > { %825 = vtanh.f32 %v519_v43  ;;  %v511_v47 = vadd.f32 %v510_v46, %v411_v44  ;;  %v512_v48 = vpop.f32.mrb[7].mxu0 }
 0x198   : > { %827 = vtanh.f32 %v520_v45  ;;  %v513_v49 = vadd.f32 %v512_v48, %v411_v44 }
 0x199   : > { %v818_v50 = vpop.eup %817  ;;  %v521_v51 = vmul.f32 0.5, %v511_v47 }
 0x19a   : > { %v820_v52 = vpop.eup %819  ;;  %v522_v53 = vmul.f32 0.5, %v513_v49  ;;  %v531_v54 = vadd.f32 1.0, %v818_v50 }
 0x19b   : > { %829 = vtanh.f32 %v521_v51  ;;  %v532_v56 = vadd.f32 1.0, %v820_v52 }
 0x19c   : > { %831 = vtanh.f32 %v522_v53  ;;  %v539_v60 = vmul.f32 %v531_v54, %v515_v29 }
 0x19d   : > { %v822_v55 = vpop.eup %821  ;;  %v540_v63 = vmul.f32 %v532_v56, %v516_v31 }
 0x19e   : > { %v824_v57 = vpop.eup %823  ;;  %v533_v58 = vadd.f32 1.0, %v822_v55 }
 0x19f   : > { %v534_v59 = vadd.f32 1.0, %v824_v57 }
 0x1a0   : > { %v541_v61 = vmul.f32 %v533_v58, %v517_v36 }
 0x1a1   : > { %v826_v62 = vpop.eup %825  ;;  %v542_v0 = vmul.f32 %v534_v59, %v518_v38 }
 0x1a2   : > { %v828_v1 = vpop.eup %827  ;;  %v749_v2 = vpack.c.bf16 %v541_v61, %v539_v60  ;;  %v535_v4 = vadd.f32 1.0, %v826_v62 }
 0x1a3   : > { %v747_v3 = vpack.c.bf16 %v542_v0, %v540_v63  ;;  %v536_v6 = vadd.f32 1.0, %v828_v1 }
 0x1a4   : > { %v543_v10 = vmul.f32 %v535_v4, %v519_v43 }
 0x1a5   : > { %v830_v5 = vpop.eup %829  ;;  %748 = vmatprep.subr.bf16.mxu1 %v747_v3  ;;  %v544_v12 = vmul.f32 %v536_v6, %v520_v45 }
 0x1a6   : > { %v832_v7 = vpop.eup %831  ;;  %v537_v8 = vadd.f32 1.0, %v830_v5  ;;  %750 = vmatpush1.bf16.msra.mxu1 %v749_v2 }
 0x1a7   : > { %v538_v9 = vadd.f32 1.0, %v832_v7 }
 0x1a8   : > { %v545_v11 = vmul.f32 %v537_v8, %v521_v51 }
 0x1a9   : > { %v546_v13 = vmul.f32 %v538_v9, %v522_v53 }
 0x1aa   : > { %v753_v14 = vpack.c.bf16 %v545_v11, %v543_v10 }
 0x1ab   : > { %v751_v16 = vpack.c.bf16 %v546_v13, %v544_v12 }
 0x1ad   : > { %752 = vmatprep.subr.bf16.mxu1 %v751_v16 }
 0x1ae   : > { %754 = vmatpush1.bf16.msra.mxu1 %v753_v14 }
 0x1b1   : > { %731 = vmatmul.mubr.msk.f32.vlgmr.msra.gmra.mrb[0].mxu1 %vm413_vm0, %v547_v17 }
 0x1b2   : > { %637 = vmatprep.mubr.f32.mxu1 %v898_v15 }
 0x1b5   : > { %732 = vmatmul.mubr.msk.f32.gmra.mrb[2].mxu1 %vm413_vm0, %v548_v18 }
 0x284   : > { %v633_v20 = vpop.f32.mrb[0].mxu1 }
 0x285   : > { %v634_v21 = vadd.f32 %v633_v20, %v554_v19  ;;  %v635_v22 = vpop.f32.mrb[1].mxu1 }
 0x286   : > { %v636_v23 = vadd.f32 %v635_v22, %v554_v19 }
 0x287   : > { %644 = vst [vmem:[%s270_s17] sm:$0xff] %v634_v21 }
 0x288   : > { %645 = vst [vmem:[%s270_s17 + $0x8] sm:$0xff] %v636_v23  ;;  %v639_v15 = vpop.f32.mrb[2].mxu1 }
 0x289   : > { %v640_v25 = vadd.f32 %v639_v15, %v559_v24  ;;  %v641_v26 = vpop.f32.mrb[3].mxu1 }
 0x28a   : > { %v642_v27 = vadd.f32 %v641_v26, %v559_v24 }
 0x28b   : > { %646 = vst [vmem:[%s270_s17 + $0x10] sm:$0x1] %v640_v25 }
 0x28c   : > { %647 = vst [vmem:[%s270_s17 + $0x18] sm:$0x1] %v642_v27 }
 0x28d   : > { %846 = shalt.err (!%p843_p3)
}
 0x28e   : > { %s847_s13 = scalar_lea.hbm %s1074_s22, 512  ;;  %s851_s16 = scalar_lea.hbm %s1124_s7, 1536 }
 0x28f   : > { %p848_p4 = scmp.ne.s32.totalorder %s1074_s22, %s847_s13  ;;  %p852_p9 = scmp.lt.u32.totalorder %s1074_s22, %s1124_s7 }
 0x290   : > { %p853_p10 = scmp.lt.u32.totalorder %s851_s16, %s847_s13  ;;  %p855_p12 = scmp.lt.u32.totalorder %s847_s13, %s1074_s22 }
 0x291   : > { %p849_p7 = pnand %p848_p4, %p981_p5 }
 0x292   : > { %p854_p11 = por %p853_p10, %p852_p9 }
 0x293   : > { %p850_p8 = pneg %p849_p7 }
 0x294   : > { %p856_p13 = por %p855_p12, %p854_p11 }
 0x296   : > { %p857_p0 = pnand %p856_p13, %p850_p8 }
 0x298   : > { %860 = shalt.err (!%p857_p0)
}
 0x299   : > { %s900_s20 = smov 256   ;;  %s901_s21 = smov 768  }
 0x29a   : > { %s902_s23 = smov 16  }
 0x29b   : > { %755 = dma.vmem_to_hbm [thread:$0]  (%p981_p5), %s1069_s18, 512, %s1074_s22, %s1076_s28, %s900_s20, %s901_s21, %s902_s23  }
 0x29c PF: > { %p761_p1 = scmp.ge.s32.totalorder %s895_s27, 2  ;;  %s677_s29 = sand.u32 1, %s883_s24  }
 0x29d   : > { %s678_s8 = scalar_lea.sflag [#allocation3], %s677_s29 }
 0x29e   : > { %p758_p2 = pnand %p761_p1, %p985_p6 }
 0x2a0   : > { %878 = dma.done.wait (!%p758_p2), %s678_s8, 512  }
 0x2a1   : > { %880 = vsyncadd (!%p758_p2), %s678_s8, 4294966784  ;;  %p17_p3 = scmp.ge.s32.totalorder %s968_s30, 5   ;;  %s1127_s24 = smov %s887_s25 }
 0x2a2   : > { %s1128_s25 = smov %s891_s26  ;;  %s1129_s26 = smov %s979_s10 }
 0x2a3   : > { %s1130_s27 = smov %s968_s30  ;;  %19 = sbr.rel (!%p17_p3) target bundleno = 3 (0x3), region = 83 }
 0x2aa   :  { %683 = vsyncpa [#allocation3], 1 }
 0x2ab   :  { %685 = vsyncpa [#allocation3 + $0x1], 1 }

</bundles_post_ra>
